<compile_context>
chip_gen: v7x
topology: tpu7x:2x2x1
jax: 0.10.0
libtpu: 0.0.40
codegen_flags: <defaults>
</compile_context>

<pallas_src>
import jax
import jax.numpy as jnp
from jax import lax
from jax.experimental import pallas as pl
from jax.experimental.pallas import tpu as pltpu


def _round_up(x, m):
    return ((x + m - 1) // m) * m


# ----------------------------- kernels --------------------------------------

def _slp_single_block_kernel(x_ref, w_ref, o_ref):
    # Whole problem as one VMEM block: out = x @ w, w already (K, N).
    o_ref[...] = jnp.dot(
        x_ref[...], w_ref[...], preferred_element_type=jnp.float32
    ).astype(o_ref.dtype)


def _slp_mn_kernel(x_ref, w_ref, o_ref):
    # Tiled over (M, N) only; full K per block -> no accumulator needed.
    o_ref[...] = jnp.dot(
        x_ref[...], w_ref[...], preferred_element_type=jnp.float32
    )


def _slp_mnk_kernel(x_ref, w_ref, o_ref):
    # Tiled over (M, N, K); accumulate directly into the resident f32 output
    # block (out index_map ignores k), no separate VMEM scratch.
    @pl.when(pl.program_id(2) == 0)
    def _():
        o_ref[...] = jnp.zeros_like(o_ref)

    o_ref[...] += jnp.dot(
        x_ref[...], w_ref[...], preferred_element_type=jnp.float32
    )


# ----------------------------- wrapper ---------------------------------------

def slp_forward(x, weight, *, compute_dtype=jnp.bfloat16,
                small_vmem_budget_bytes=4 * 1024 * 1024):
    """Forward pass of SLPNet: out = x @ weight.T (no bias), f32 output.

    x:      (B, in_features)             float32
    weight: (out_features, in_features)  float32  (PyTorch nn.Linear layout)
    """
    B, K = x.shape
    N, Kw = weight.shape
    assert K == Kw, "in_features mismatch between x and weight"

    itemsize = jnp.dtype(compute_dtype).itemsize

    # Cast in the wrapper so in-kernel HBM reads are already half-width, and
    # transpose the weight once to (K, N) (XLA fuses transpose+cast) so the
    # kernel is a standard NN matmul.
    x_c = x.astype(compute_dtype)
    w_c = weight.T.astype(compute_dtype)          # (K, N)

    cost = pl.CostEstimate(
        flops=2 * B * K * N,
        bytes_accessed=itemsize * (B * K + K * N) + 4 * B * N,
        transcendentals=0,
    )

    # ---- small path: everything as single whole-array VMEM blocks ----------
    small_bytes = itemsize * (B * K + K * N) + 4 * B * N
    if small_bytes <= small_vmem_budget_bytes:
        return pl.pallas_call(
            _slp_single_block_kernel,
            out_shape=jax.ShapeDtypeStruct((B, N), jnp.float32),
            cost_estimate=cost,
        )(x_c, w_c)

    # ---- tiled path ---------------------------------------------------------
    M_pad = _round_up(B, 16)        # bf16 sublane packing
    N_pad = _round_up(N, 128)
    K_pad = _round_up(K, 128)

    # tk: take the whole K when it fits -> no reduction axis at all.
    tk = K_pad if K_pad <= 4096 else 2048
    # tm: take the whole (padded) batch when it fits -> weight streamed once.
    tm = M_pad if M_pad <= 1024 else 512
    # tn: 512 normally (multiple of 256 for v6e/v7x MXU, of 128 for v5e); when
    # the M grid extent is 1, use 256 so N still has >=2 parallel blocks for
    # v7x's two TensorCores.
    if tm == M_pad and N_pad >= 512:
        tn = 256
    else:
        tn = min(512, N_pad)

    M_pad = _round_up(M_pad, tm)
    N_pad = _round_up(N_pad, tn)
    K_pad = _round_up(K_pad, tk)

    if (M_pad, K_pad) != (B, K):
        x_c = jnp.pad(x_c, ((0, M_pad - B), (0, K_pad - K)))
    if (K_pad, N_pad) != (K, N):
        w_c = jnp.pad(w_c, ((0, K_pad - K), (0, N_pad - N)))

    gm, gn, gk = M_pad // tm, N_pad // tn, K_pad // tk

    if gk == 1:
        kernel = _slp_mn_kernel
        grid_spec = pltpu.PrefetchScalarGridSpec(
            num_scalar_prefetch=0,
            grid=(gm, gn),
            in_specs=[
                pl.BlockSpec((tm, tk), lambda i, j: (i, 0)),   # x tile
                pl.BlockSpec((tk, tn), lambda i, j: (0, j)),   # w tile (K,N)
            ],
            out_specs=pl.BlockSpec((tm, tn), lambda i, j: (i, j)),
        )
        dim_sem = ("parallel", "parallel")
    else:
        kernel = _slp_mnk_kernel
        grid_spec = pltpu.PrefetchScalarGridSpec(
            num_scalar_prefetch=0,
            grid=(gm, gn, gk),
            in_specs=[
                pl.BlockSpec((tm, tk), lambda i, j, k: (i, k)),
                pl.BlockSpec((tk, tn), lambda i, j, k: (k, j)),
            ],
            out_specs=pl.BlockSpec((tm, tn), lambda i, j, k: (i, j)),
        )
        dim_sem = ("parallel", "parallel", "arbitrary")

    out = pl.pallas_call(
        kernel,
        out_shape=jax.ShapeDtypeStruct((M_pad, N_pad), jnp.float32),
        grid_spec=grid_spec,
        compiler_params=pltpu.CompilerParams(
            dimension_semantics=dim_sem,
            vmem_limit_bytes=48 * 1024 * 1024,
        ),
        cost_estimate=cost,
    )(x_c, w_c)

    if (M_pad, N_pad) != (B, N):
        out = out[:B, :N]
    return out


# ----------------------------- demo / checks ---------------------------------

if __name__ == "__main__":
    # Small shapes consistent with SLPNet(input_size, output_size).
    B, INPUT_SIZE, OUTPUT_SIZE = 8, 32, 16

    key = jax.random.PRNGKey(0)
    kx, kw = jax.random.split(key)
    x = jax.random.normal(kx, (B, INPUT_SIZE), dtype=jnp.float32)
    weight = jax.random.normal(kw, (OUTPUT_SIZE, INPUT_SIZE), dtype=jnp.float32)

    out = jax.block_until_ready(slp_forward(x, weight))
    ref = jnp.dot(x.astype(jnp.bfloat16).astype(jnp.float32),
                  weight.astype(jnp.bfloat16).astype(jnp.float32).T,
                  precision=lax.Precision.HIGHEST)
    assert out.shape == (B, OUTPUT_SIZE)
    assert jnp.allclose(out, ref, atol=1e-3, rtol=1e-3)

    # Tiled path, no K reduction axis (grid (1, gn), weight streamed once).
    B2, IN2, OUT2 = 1024, 2048, 1280
    kx2, kw2 = jax.random.split(jax.random.PRNGKey(1))
    x2 = jax.random.normal(kx2, (B2, IN2), dtype=jnp.float32)
    w2 = jax.random.normal(kw2, (OUT2, IN2), dtype=jnp.float32)
    out2 = jax.block_until_ready(slp_forward(x2, w2))
    ref2 = jnp.dot(x2.astype(jnp.bfloat16).astype(jnp.float32),
                   w2.astype(jnp.bfloat16).astype(jnp.float32).T,
                   precision=lax.Precision.HIGHEST)
    assert out2.shape == (B2, OUT2)
    rel2 = jnp.max(jnp.abs(out2 - ref2)) / jnp.max(jnp.abs(ref2))
    assert rel2 < 5e-3

    # Tiled path with a K reduction axis (accumulate into resident f32 block).
    B3, IN3, OUT3 = 256, 8192, 512
    kx3, kw3 = jax.random.split(jax.random.PRNGKey(2))
    x3 = jax.random.normal(kx3, (B3, IN3), dtype=jnp.float32)
    w3 = jax.random.normal(kw3, (OUT3, IN3), dtype=jnp.float32)
    out3 = jax.block_until_ready(slp_forward(x3, w3))
    ref3 = jnp.dot(x3.astype(jnp.bfloat16).astype(jnp.float32),
                   w3.astype(jnp.bfloat16).astype(jnp.float32).T,
                   precision=lax.Precision.HIGHEST)
    assert out3.shape == (B3, OUT3)
    rel3 = jnp.max(jnp.abs(out3 - ref3)) / jnp.max(jnp.abs(ref3))
    assert rel3 < 5e-3

    print("KERNEL_OK")
</pallas_src>

<mosaic_0001>
module attributes {stable_mosaic.version = 11 : i64} {
  func.func @_slp_single_block_kernel(%arg0: memref<8x32xbf16, #tpu.memory_space<vmem>>, %arg1: memref<32x16xbf16, #tpu.memory_space<vmem>>, %arg2: memref<8x16xf32, #tpu.memory_space<vmem>>) attributes {dimension_semantics = [], scalar_prefetch = 0 : i64, scratch_operands = 0 : i64, tpu.core_type = #tpu.core_type<tc>} {
    %c0 = arith.constant 0 : index
    %c0_0 = arith.constant 0 : index
    %0 = vector.load %arg0[%c0, %c0_0] : memref<8x32xbf16, #tpu.memory_space<vmem>>, vector<8x32xbf16>
    %c0_1 = arith.constant 0 : index
    %c0_2 = arith.constant 0 : index
    %1 = vector.load %arg1[%c0_1, %c0_2] : memref<32x16xbf16, #tpu.memory_space<vmem>>, vector<32x16xbf16>
    %cst = arith.constant dense<0.000000e+00> : vector<8x16xf32>
    %2 = tpu.matmul %0, %1, %cst {dimension_numbers = #tpu.dot_dimension_numbers<[1], [0], [0], [1], [0, 0, 1, 1], [], []>} : vector<8x32xbf16>, vector<32x16xbf16>, vector<8x16xf32> -> vector<8x16xf32>
    %c0_3 = arith.constant 0 : index
    %c0_4 = arith.constant 0 : index
    %3 = vector.load %arg2[%c0_3, %c0_4] : memref<8x16xf32, #tpu.memory_space<vmem>>, vector<8x16xf32>
    tpu.vector_store %arg2[%c0_3, %c0_4], %2 {strides = array<i32>} : memref<8x16xf32, #tpu.memory_space<vmem>>, vector<8x16xf32>,
    return
  }
}

</mosaic_0001>

<bundles_post_ra>
// kernel: tpu_custom_call.1
= control target key start
LH: loop header
LB: loop body
LE: loop exit
PB: predicated region body
PF: predicated region fallthrough
CT: control target
= control target key end

     0   :  { %v133_v1 = vmov 0.0   ;;  %vm134_vm0 = vmmov 0   ;;  %s172_s0 = inlined_call_operand.vmem [shape: bf16[8,32], index: 0, kind: input, shape index: {}]   ;;  %s173_s1 = inlined_call_operand.vmem [shape: bf16[32,16], index: 1, kind: input, shape index: {}]   ;;  %s174_s2 = inlined_call_operand.hbm [shape: f32[8,16], index: 2, kind: output, shape index: {}]  }
   0x1   :  { %v107_v0 = vld [vmem:[%s173_s1] sm:$0xff]   ;;  %96 = vmatprep.subr.bf16.mxu0 %v133_v1  ;;  %v108_v2 = vld [vmem:[%s173_s1 + $0x8] sm:$0xff]   ;;  %100 = vmatprep.mubr.msk.bf16.mxu0 %vm134_vm0, %v133_v1 }
   0x2   :  { %97 = vmatpush3.bf16.msra.mxu0 %v107_v0 }
   0x3   :  { %7 = vsyncpa [#allocation3], 0  ;;  %98 = vmatprep.subr.bf16.mxu0 %v133_v1  ;;  %v13_v3 = vld [vmem:[%s172_s0] sm:$0xf]  ;;  %vm30_vm1 = vcmask 261120   ;;  %s135_s15 = smov [#allocation2]  }
   0x4   :  { %s82_s16 = sshll.u32 %s135_s15, 4  ;;  %vm74_vm2 = vcmask 130048   ;;  %s83_s16 = int_to_ptr.vmem [resolvable:$true] %s82_s16 }
   0x5   :  { %s109_s1 = scalar_lea.vmem %s83_s16, 128  ;;  %p114_p1 = scmp.lt.s32.totalorder %s83_s16, %s83_s16 }
   0x6   :  { %99 = vmatpush3.bf16.msra.mxu0 %v108_v2  ;;  %p110_p0 = scmp.ne.s32.totalorder %s83_s16, %s109_s1  ;;  %p115_p2 = scmp.lt.s32.totalorder %s109_s1, %s109_s1 }
   0x8   :  { %p116_p3 = por %p115_p2, %p114_p1 }
   0x9   :  { %101 = vmatmul.mubr.msk.bf16.vlgmr.msra.gmra.mrb[0].mxu0 %vm30_vm1, %v13_v3 }
   0xa   :  { %p117_p4 = pnand %p116_p3, %p110_p0 }
  0xdc   :  { %v68_v4 = vpop.f32.mrb[0].mxu0 }
  0xdd   :  { %75 = vst.msk [vmem:[#allocation2] sm:$0xff] %vm74_vm2, %v68_v4  ;;  %v102_v5 = vpop.f32.mrb[1].mxu0 }
  0xde   :  { %v71_v6 = vpop.f32.mrb[2].mxu0 }
  0xdf   :  { %120 = shalt.err (!%p117_p4)
}
  0xe0   :  { %s121_s0 = scalar_lea.hbm %s174_s2, 128 }
  0xe1   :  { %p122_p5 = scmp.ne.s32.totalorder %s174_s2, %s121_s0  ;;  %p125_p6 = scmp.lt.u32.totalorder %s121_s0, %s174_s2 }
  0xe3   :  { %p127_p7 = pnand %p125_p6, %p122_p5 }
  0xe5   :  { %130 = shalt.err (!%p127_p7)
}
  0xe6   :  { %85 = dma.vmem_to_hbm [thread:$0]  %s83_s16, 128, %s174_s2, [#allocation3]   ;;  %v103_v7 = vpop.f32.mrb[3].mxu0 }
  0xe7   :  { %131 = dma.done.wait [#allocation3], 128  }
  0xe8   :  { %132 = vsyncadd [#allocation3], 4294967168 }
  0xe9   :  { %89 = vsyncpa [#allocation3], 1 }

</bundles_post_ra>
